<compile_context>
chip_gen: v5e
topology: v5e:2x2
jax: 0.10.0
libtpu: 0.0.40
codegen_flags: <defaults>
</compile_context>

<pallas_src>
import jax
import jax.numpy as jnp
from jax.experimental import pallas as pl
from jax.experimental.pallas import tpu as pltpu


# ----------------------------------------------------------------------------
# Kernel
# ----------------------------------------------------------------------------
def _decoder_kernel(x_ref, w1_ref, w2_ref, b1_ref, b2_ref, o_ref):
    """Fused MLP tile: relu(relu(x @ W1 + b1) @ W2 + b2), f32 accumulate."""
    h = jnp.dot(x_ref[...], w1_ref[...], preferred_element_type=jnp.float32)
    h = jnp.maximum(h + b1_ref[...], 0.0)                 # f32 bias + ReLU
    y = jnp.dot(h.astype(w2_ref.dtype), w2_ref[...],
                preferred_element_type=jnp.float32)
    y = jnp.maximum(y + b2_ref[...], 0.0)                 # f32 bias + ReLU
    o_ref[...] = y.astype(o_ref.dtype)


# ----------------------------------------------------------------------------
# Host-side helpers
# ----------------------------------------------------------------------------
def _sublane(dtype):
    """Rows per sublane-aligned tile for this dtype (8 f32, 16 bf16, 32 i8)."""
    return max(8, 32 // jnp.dtype(dtype).itemsize)


def prepare_decoder_params(w1, b1, w2, b2, *, compute_dtype=jnp.bfloat16):
    """One-time parameter preprocessing, hoisted out of the per-call forward.

    w1: (R, R), w2: (R, I) stored as (in_features, out_features) — the
    transpose of PyTorch's Linear.weight.  Biases may be (n,) or (1, n).
    Weights are cast once to `compute_dtype` (bf16 default: native MXU dtype
    on v5e/v6e/v7x and half the DMA bytes).  Biases are kept in f32 so the
    bias + ReLU epilogue stays exact on all generations.
    """
    return {
        "w1": jnp.asarray(w1, dtype=compute_dtype),
        "w2": jnp.asarray(w2, dtype=compute_dtype),
        "b1": jnp.asarray(b1, dtype=jnp.float32).reshape(1, -1),
        "b2": jnp.asarray(b2, dtype=jnp.float32).reshape(1, -1),
    }


def decoder_forward(x, params, *, block_batch=None, out_dtype=None,
                    small_path_vmem_bytes=24 << 20):
    """Decoder forward.  x: (B, R) -> (B, I).

    If block_batch is None and the whole problem fits the VMEM budget, a
    single no-grid call is used.  Otherwise the batch dim is tiled; weights
    and biases stay VMEM-resident across the grid.
    """
    w1, w2, b1, b2 = params["w1"], params["w2"], params["b1"], params["b2"]
    B, R = x.shape
    Rw, I = w2.shape
    assert w1.shape == (R, R) and Rw == R
    assert b1.shape == (1, R) and b2.shape == (1, I)

    compute_dtype = w1.dtype
    if out_dtype is None:
        out_dtype = x.dtype            # keep caller dtype; bf16 also fine downstream
    # Cast x once to the compute dtype (halves the kernel's x HBM read for
    # bf16 params).  For repeated inference, produce x in bf16 upstream to
    # avoid even this pass.
    xc = x.astype(compute_dtype)

    in_b = jnp.dtype(compute_dtype).itemsize
    out_b = jnp.dtype(out_dtype).itemsize
    weight_bytes = (R * R + R * I) * in_b + (R + I) * 4

    # ---------- small path: whole problem resident in VMEM, no grid ----------
    act_bytes = B * (R * in_b + I * out_b) + 2 * B * (R + I) * 4  # + f32 temps
    if block_batch is None and act_bytes + weight_bytes <= small_path_vmem_bytes:
        return pl.pallas_call(
            _decoder_kernel,
            out_shape=jax.ShapeDtypeStruct((B, I), out_dtype),
            in_specs=[pl.BlockSpec(memory_space=pltpu.MemorySpace.VMEM)] * 5,
            out_specs=pl.BlockSpec(memory_space=pltpu.MemorySpace.VMEM),
        )(xc, w1, w2, b1, b2)

    # ---------- tiled path: batch-only grid, weights VMEM-resident ----------
    sub = _sublane(compute_dtype)
    if block_batch is None:
        # Target ~8 MiB of double-buffered activation tiles per grid step:
        # big enough to amortize the ~0.35us per-step pipeline overhead, small
        # enough to leave headroom in v7x's 64 MiB VMEM.
        per_row = 2 * (R * in_b + I * out_b) + 2 * (R + I) * 4
        block_batch = max(sub, min(2048, (8 << 20) // per_row))
        block_batch = (block_batch // sub) * sub

    if block_batch >= B:
        tb = B                          # single block == full dim (always legal)
    else:
        if block_batch % sub:
            raise ValueError(
                f"block_batch={block_batch} must be a multiple of {sub} "
                f"for dtype {jnp.dtype(compute_dtype).name}")
        tb = block_batch

    grid = (pl.cdiv(B, tb),)
    # NOTE(v7x): for best 2-TensorCore utilisation pick tb so len(grid) is a
    # multiple of 2 when B is large.

    vmem_needed = (2 * tb * R * in_b          # x tile double buffer
                   + 2 * tb * I * out_b       # out tile double buffer
                   + 2 * weight_bytes         # resident weights/biases (2x buffered)
                   + 2 * tb * (R + I) * 4)    # f32 matmul results / epilogue temps
    cp_kwargs = dict(dimension_semantics=("parallel",))
    if vmem_needed > (24 << 20):              # raise scoped VMEM only when needed
        cp_kwargs["vmem_limit_bytes"] = int(min(vmem_needed + (8 << 20), 112 << 20))

    return pl.pallas_call(
        _decoder_kernel,
        out_shape=jax.ShapeDtypeStruct((B, I), out_dtype),   # exact, no slice after
        grid=grid,
        in_specs=[
            pl.BlockSpec((tb, R), lambda i: (i, 0)),          # x batch tile
            pl.BlockSpec((R, R), lambda i: (0, 0)),           # w1 (resident)
            pl.BlockSpec((R, I), lambda i: (0, 0)),           # w2 (resident)
            pl.BlockSpec((1, R), lambda i: (0, 0)),           # b1 (resident, f32)
            pl.BlockSpec((1, I), lambda i: (0, 0)),           # b2 (resident, f32)
        ],
        out_specs=pl.BlockSpec((tb, I), lambda i: (i, 0)),
        compiler_params=pltpu.CompilerParams(**cp_kwargs),
    )(xc, w1, w2, b1, b2)


def _reference(x, w1, b1, w2, b2):
    x = x.astype(jnp.float32)
    h = jnp.maximum(x @ w1.astype(jnp.float32) + b1.astype(jnp.float32).reshape(1, -1), 0.0)
    return jnp.maximum(h @ w2.astype(jnp.float32) + b2.astype(jnp.float32).reshape(1, -1), 0.0)


# ----------------------------------------------------------------------------
# Self-test
# ----------------------------------------------------------------------------
if __name__ == "__main__":
    # Shapes implied by the module: x is (batch, reduced_shape),
    # output is (batch, input_shape).
    batch = 8
    reduced_shape = 32
    input_shape = 64
    dtype = jnp.float32

    key = jax.random.PRNGKey(0)
    kx, k1, k2, k3, k4, kx2 = jax.random.split(key, 6)

    x = jax.random.normal(kx, (batch, reduced_shape), dtype=dtype)

    # Deterministic PyTorch-style uniform init, stored as (in, out).
    bound = 1.0 / jnp.sqrt(jnp.float32(reduced_shape))
    w1 = jax.random.uniform(k1, (reduced_shape, reduced_shape), dtype=dtype,
                            minval=-bound, maxval=bound)
    b1 = jax.random.uniform(k2, (reduced_shape,), dtype=dtype,
                            minval=-bound, maxval=bound)
    w2 = jax.random.uniform(k3, (reduced_shape, input_shape), dtype=dtype,
                            minval=-bound, maxval=bound)
    b2 = jax.random.uniform(k4, (input_shape,), dtype=dtype,
                            minval=-bound, maxval=bound)

    params_f32 = prepare_decoder_params(w1, b1, w2, b2, compute_dtype=jnp.float32)
    params_bf16 = prepare_decoder_params(w1, b1, w2, b2)     # bf16 default

    # --- small path (no grid, whole problem VMEM-resident), f32 exact ---
    ref_small = _reference(x, w1, b1, w2, b2)
    out = jax.block_until_ready(decoder_forward(x, params_f32))
    assert out.shape == (batch, input_shape)
    assert jnp.allclose(out, ref_small, atol=1e-5, rtol=1e-5)

    # --- tiled path (batch grid, resident weights, ragged last tile), f32 ---
    big_batch = 600                   # deliberately not a multiple of the tile
    xb = jax.random.normal(kx2, (big_batch, reduced_shape), dtype=dtype)
    ref_big = _reference(xb, w1, b1, w2, b2)
    out_b = jax.block_until_ready(decoder_forward(xb, params_f32, block_batch=256))
    assert out_b.shape == (big_batch, input_shape)
    assert jnp.allclose(out_b, ref_big, atol=1e-5, rtol=1e-5)

    # --- tiled path with default bf16 operands (f32 accumulate / epilogue) ---
    out_bf = jax.block_until_ready(decoder_forward(xb, params_bf16, block_batch=256))
    assert out_bf.shape == (big_batch, input_shape)
    assert jnp.allclose(out_bf, ref_big, atol=5e-2, rtol=5e-2)

    print("KERNEL_OK")
</pallas_src>

<mosaic_0001>
module attributes {stable_mosaic.version = 11 : i64} {
  func.func @_decoder_kernel(%arg0: memref<8x32xf32, #tpu.memory_space<vmem>>, %arg1: memref<32x32xf32, #tpu.memory_space<vmem>>, %arg2: memref<32x64xf32, #tpu.memory_space<vmem>>, %arg3: memref<1x32xf32, #tpu.memory_space<vmem>>, %arg4: memref<1x64xf32, #tpu.memory_space<vmem>>, %arg5: memref<8x64xf32, #tpu.memory_space<vmem>>) attributes {dimension_semantics = [], scalar_prefetch = 0 : i64, scratch_operands = 0 : i64, tpu.core_type = #tpu.core_type<tc>} {
    %c0 = arith.constant 0 : index
    %c0_0 = arith.constant 0 : index
    %0 = vector.load %arg0[%c0, %c0_0] : memref<8x32xf32, #tpu.memory_space<vmem>>, vector<8x32xf32>
    %c0_1 = arith.constant 0 : index
    %c0_2 = arith.constant 0 : index
    %1 = vector.load %arg1[%c0_1, %c0_2] : memref<32x32xf32, #tpu.memory_space<vmem>>, vector<32x32xf32>
    %cst = arith.constant dense<0.000000e+00> : vector<8x32xf32>
    %2 = tpu.matmul %0, %1, %cst {dimension_numbers = #tpu.dot_dimension_numbers<[1], [0], [0], [1], [0, 0, 1, 1], [], []>} : vector<8x32xf32>, vector<32x32xf32>, vector<8x32xf32> -> vector<8x32xf32>
    %c0_3 = arith.constant 0 : index
    %c0_4 = arith.constant 0 : index
    %3 = vector.load %arg3[%c0_3, %c0_4] : memref<1x32xf32, #tpu.memory_space<vmem>>, vector<1x32xf32>
    %4 = vector.broadcast %3 : vector<1x32xf32> to vector<8x32xf32>
    %5 = arith.addf %2, %4 : vector<8x32xf32>
    %cst_5 = arith.constant 0.000000e+00 : f32
    %6 = vector.broadcast %cst_5 : f32 to vector<8x32xf32>
    %7 = arith.maximumf %5, %6 : vector<8x32xf32>
    %c0_6 = arith.constant 0 : index
    %c0_7 = arith.constant 0 : index
    %8 = vector.load %arg2[%c0_6, %c0_7] : memref<32x64xf32, #tpu.memory_space<vmem>>, vector<32x64xf32>
    %cst_8 = arith.constant dense<0.000000e+00> : vector<8x64xf32>
    %9 = tpu.matmul %7, %8, %cst_8 {dimension_numbers = #tpu.dot_dimension_numbers<[1], [0], [0], [1], [0, 0, 1, 1], [], []>} : vector<8x32xf32>, vector<32x64xf32>, vector<8x64xf32> -> vector<8x64xf32>
    %c0_9 = arith.constant 0 : index
    %c0_10 = arith.constant 0 : index
    %10 = vector.load %arg4[%c0_9, %c0_10] : memref<1x64xf32, #tpu.memory_space<vmem>>, vector<1x64xf32>
    %11 = vector.broadcast %10 : vector<1x64xf32> to vector<8x64xf32>
    %12 = arith.addf %9, %11 : vector<8x64xf32>
    %cst_11 = arith.constant 0.000000e+00 : f32
    %13 = vector.broadcast %cst_11 : f32 to vector<8x64xf32>
    %14 = arith.maximumf %12, %13 : vector<8x64xf32>
    %c0_12 = arith.constant 0 : index
    %c0_13 = arith.constant 0 : index
    %15 = vector.load %arg5[%c0_12, %c0_13] : memref<8x64xf32, #tpu.memory_space<vmem>>, vector<8x64xf32>
    tpu.vector_store %arg5[%c0_12, %c0_13], %14 {strides = array<i32>} : memref<8x64xf32, #tpu.memory_space<vmem>>, vector<8x64xf32>,
    return
  }
}

</mosaic_0001>

<bundles_post_ra>
// kernel: tpu_custom_call.1
= control target key start
LH: loop header
LB: loop body
LE: loop exit
PB: predicated region body
PF: predicated region fallthrough
CT: control target
= control target key end

     0   :  { %10 = vsyncpa [#allocation3], 0  ;;  %s318_s0 = inlined_call_operand.hbm [shape: f32[8,32], index: 0, kind: input, shape index: {}]   ;;  %s319_s1 = inlined_call_operand.hbm [shape: f32[32,32], index: 1, kind: input, shape index: {}]   ;;  %s320_s2 = inlined_call_operand.hbm [shape: f32[32,64], index: 2, kind: input, shape index: {}]   ;;  %s321_s3 = inlined_call_operand.vmem [shape: f32[1,32], index: 3, kind: input, shape index: {}]   ;;  %s322_s4 = inlined_call_operand.vmem [shape: f32[1,64], index: 4, kind: input, shape index: {}]   ;;  %s323_s5 = inlined_call_operand.hbm [shape: f32[8,64], index: 5, kind: output, shape index: {}]  }
   0x1   :  { %11 = vsyncpa [#allocation6], 0  ;;  %s28_s20 = sshll.u32 %s319_s1, 4  ;;  %s29_s20 = int_to_ptr.hbm [resolvable:$true] %s28_s20 }
   0x2   :  { %12 = vsyncpa [#allocation4], 0  ;;  %s264_s21 = smov [#allocation5]   ;;  %s18_s25 = sshll.u32 %s318_s0, 4  ;;  %s19_s25 = int_to_ptr.hbm [resolvable:$true] %s18_s25 }
   0x3   :  { %s30_s22 = sshll.u32 %s264_s21, 4  ;;  %s265_s26 = smov 128   ;;  %s31_s22 = int_to_ptr.vmem [resolvable:$true] %s30_s22 }
   0x4   :  { %s266_s27 = smov 8   ;;  %s267_s28 = smov [#allocation2]  }
   0x5   :  { %36 = dma.hbm_to_vmem [thread:$0]  %s29_s20, 512, %s31_s22, [#allocation6], %s265_s26, %s265_s26, %s266_s27  }
   0x6   :  { %s20_s29 = sshll.u32 %s267_s28, 4  ;;  %s41_s7 = sshll.u32 %s320_s2, 4  ;;  %s21_s29 = int_to_ptr.vmem [resolvable:$true] %s20_s29  ;;  %s42_s7 = int_to_ptr.hbm [resolvable:$true] %s41_s7 }
   0x7   :  { %23 = dma.hbm_to_vmem [thread:$0]  %s19_s25, 128, %s21_s29, [#allocation3]  }
   0x8   :  { %s268_s1 = smov [#allocation7]  }
   0x9   :  { %s43_s8 = sshll.u32 %s268_s1, 4  ;;  %s44_s8 = int_to_ptr.vmem [resolvable:$true] %s43_s8 }
   0xa   :  { %49 = dma.hbm_to_vmem [thread:$0]  %s42_s7, 512, %s44_s8, [#allocation6], %s265_s26, %s265_s26, %s266_s27  }
   0xb   :  { %258 = dma.done.wait [#allocation3], 128  }
   0xc   :  { %259 = vsyncadd [#allocation3], 4294967168 }
   0xd   :  { %260 = dma.done.wait [#allocation6], 1024  }
   0xe   :  { %261 = vsyncadd [#allocation6], 4294966272  ;;  %v70_v0 = vld [vmem:[#allocation5 + $0x18] sm:$0xff]  ;;  %v69_v1 = vld [vmem:[#allocation5 + $0x10] sm:$0xff]  ;;  %vm75_vm0 = vcmask 261120   ;;  %s269_s11 = smov [#allocation8]  }
   0xf   :  { %91 = vmatpush.msra.mxu0 %v70_v0  ;;  %v103_v2 = vld [vmem:[#allocation7 + $0x18] sm:$0xff]  ;;  %v68_v3 = vld [vmem:[#allocation5 + $0x8] sm:$0xff]  ;;  %v67_v4 = vld [vmem:[#allocation5] sm:$0xff]  ;;  %s139_s12 = sshll.u32 %s269_s11, 4  ;;  %s141_s15 = sshll.u32 %s323_s5, 4  ;;  %vm132_vm1 = vcmask 523264   ;;  %s140_s12 = int_to_ptr.vmem [resolvable:$true] %s139_s12  ;;  %s142_s15 = int_to_ptr.hbm [resolvable:$true] %s141_s15 }
  0x10   :  { %123 = vmatpush.msra.mxu1 %v103_v2  ;;  %v66_v5 = vld [vmem:[#allocation2] sm:$0xff]  ;;  %v102_v6 = vld [vmem:[#allocation7 + $0x10] sm:$0xff]  ;;  %v101_v7 = vld [vmem:[#allocation7 + $0x8] sm:$0xff] }
  0x11   :  { %92 = vmatpush.msra.mxu0 %v69_v1  ;;  %v100_v8 = vld [vmem:[#allocation7] sm:$0xff]  ;;  %v160_v9 = vld [vmem:[%s321_s3] ss:$0 sm:$0xff] }
  0x12   :  { %124 = vmatpush.msra.mxu1 %v102_v6  ;;  %v161_v13 = vld [vmem:[%s322_s4] ss:$0 sm:$0xff] }
  0x13   :  { %93 = vmatpush.msra.mxu0 %v68_v3 }
  0x14   :  { %125 = vmatpush.msra.mxu1 %v101_v7 }
  0x15   :  { %94 = vmatpush.msra.mxu0 %v67_v4 }
  0x16   :  { %152 = vmatmul.msk.f32.vlgmr.msra.gmra.mxu0 %vm75_vm0, %v66_v5  ;;  %126 = vmatpush.msra.mxu1 %v100_v8 }
  0x93   :  { %v96_v10 = vpop.f32.mrf.mxu0 }
  0x94   :  { %v97_v11 = vadd.f32 %v160_v9, %v96_v10 }
  0x96   :  { %v99_v12 = vmax.f32 %v97_v11, 0.0 }
  0x98   :  { %153 = vmatmul.msk.f32.vlgmr.msra.gmra.mxu1 %vm75_vm0, %v99_v12 }
 0x115   :  { %v128_v14 = vpop.f32.mrf.mxu1 }
 0x116   :  { %v129_v15 = vadd.f32 %v161_v13, %v128_v14 }
 0x118   :  { %v131_v16 = vmax.f32 %v129_v15, 0.0 }
 0x11a   :  { %133 = vst.msk [vmem:[#allocation8] sm:$0xff] %vm132_vm1, %v131_v16 }
 0x11b   :  { %144 = dma.vmem_to_hbm [thread:$0]  %s140_s12, 128, %s142_s15, [#allocation4]  }
 0x11c   :  { %262 = dma.done.wait [#allocation4], 128  }
 0x11d   :  { %263 = vsyncadd [#allocation4], 4294967168 }
 0x11e   :  { %149 = vsyncpa [#allocation3], 1 }
 0x11f   :  { %150 = vsyncpa [#allocation6], 1 }
 0x120   :  { %151 = vsyncpa [#allocation4], 1 }

</bundles_post_ra>
